<compile_context>
chip_gen: v5e
topology: v5e:2x2
jax: 0.10.0
libtpu: 0.0.40
codegen_flags: <defaults>
</compile_context>

<pallas_src>
import jax
import jax.numpy as jnp
from jax.experimental import pallas as pl
from jax.experimental.pallas import tpu as pltpu

BN_EPS = 1e-5


def _mlp_kernel(x_ref, w1_ref, b1_ref, w2t_ref, b2_ref, o_ref):
    # x_ref: (tb, D)   w1_ref: (D, H)   b1_ref: (1, H)
    # w2t_ref: (8, H)  row 0 = BN-folded w2^T, rows 1..7 zero padding
    # b2_ref: (1,) scalar in SMEM       o_ref: (1, tb) lane-dense output row
    h = jnp.dot(x_ref[...], w1_ref[...], preferred_element_type=jnp.float32)
    h = jnp.maximum(h + b1_ref[...], 0.0)               # bias + ReLU (VPU)
    # (BatchNorm eval-mode affine folded into w2t/b2; Dropout is identity.)
    # Second linear as A @ B^T (flash-attention q@k^T pattern): result is a
    # lane-dense (8, tb) slab; rows 1..7 are zero and discarded.
    y8 = jax.lax.dot_general(
        w2t_ref[...], h,
        dimension_numbers=(((1,), (1,)), ((), ())),
        preferred_element_type=jnp.float32)              # (8, tb)
    y = y8[0:1, :] + b2_ref[0]                           # (1, tb)
    # Sigmoid via tanh: transcendental on the EUP slot, no VPU divide sequence.
    o_ref[...] = 0.5 * (jnp.tanh(0.5 * y) + 1.0)


def torch_mlp_forward(x, params, *, block_b=2048, core_parallel=False,
                      vmem_limit_bytes=None):
    """Eval-mode TorchMLP forward. x: (B, input_dim). Returns (B, 1) float32."""
    B, D = x.shape
    H = params["w1"].shape[1]

    # ---- Fold eval-mode BatchNorm1d into the second Linear (wrapper-side). ----
    inv_std = 1.0 / jnp.sqrt(params["var"] + BN_EPS)             # (1, H)
    scale = params["gamma"] * inv_std                            # (1, H)
    shift = params["beta"] - params["mean"] * scale              # (1, H)
    w2t_eff = (scale * params["w2"].T).astype(jnp.float32)       # (1, H)
    b2_eff = (params["b2"] + shift @ params["w2"]).reshape(1)    # (1,) scalar
    # Pad the folded row to 8 sublanes so the MXU operand is layout-friendly.
    w2t_eff8 = jnp.concatenate([w2t_eff, jnp.zeros((7, H), jnp.float32)], axis=0)

    # Stream x as-is (no wrapper cast); only the tiny weights follow its dtype.
    w1 = params["w1"].astype(x.dtype)
    b1 = params["b1"].astype(jnp.float32)

    # ---- Batch tiling: (tb, D) row tiles in, lane-dense (1, tb) rows out. ----
    def rnd(v, m):
        return int(pl.cdiv(v, m) * m)

    tb = max(128, min(rnd(block_b, 128), rnd(B, 128)))   # multiple of 128
    bp = rnd(B, tb)                                       # padded batch
    g = bp // tb
    xp = x if bp == B else jnp.pad(x, ((0, bp - B), (0, 0)))

    # ---- VMEM budget (lane/sublane-padded footprints): raise the scoped limit
    # only if the double-buffered x tile + intermediates would exceed v5e's
    # 16 MiB default; cap at 56 MiB for v7x's 64 MiB physical VMEM. ----
    xbytes = jnp.dtype(x.dtype).itemsize
    est = (2 * tb * rnd(D, 128) * xbytes                       # x double buffer
           + 2 * (rnd(D, 8) + 8 + 8) * rnd(H, 128) * 4         # w1 / b1 / w2t8
           + 2 * 8 * rnd(tb, 128) * 4                          # output double buffer
           + 3 * tb * rnd(H, 128) * 4)                         # h / relu / y8 scratch
    if vmem_limit_bytes is None and est > (12 << 20):
        vmem_limit_bytes = min(est + (4 << 20), 56 << 20)

    sem = (pltpu.CORE_PARALLEL,) if core_parallel else ("parallel",)
    cp_kwargs = dict(dimension_semantics=sem)
    if vmem_limit_bytes is not None:
        cp_kwargs["vmem_limit_bytes"] = int(vmem_limit_bytes)

    out = pl.pallas_call(
        _mlp_kernel,
        out_shape=jax.ShapeDtypeStruct((1, bp), jnp.float32),
        grid=(g,),
        in_specs=[
            pl.BlockSpec((tb, D), lambda i: (i, 0)),        # x tile (double-buffered)
            pl.BlockSpec((D, H), lambda i: (0, 0)),         # w1, VMEM-resident
            pl.BlockSpec((1, H), lambda i: (0, 0)),         # b1
            pl.BlockSpec((8, H), lambda i: (0, 0)),         # folded w2^T (row 0 live)
            pl.BlockSpec(memory_space=pltpu.SMEM),          # b2_eff scalar (1,)
        ],
        out_specs=pl.BlockSpec((1, tb), lambda i: (0, i)),   # lane-dense output row
        compiler_params=pltpu.CompilerParams(**cp_kwargs),
    )(xp, w1, b1, w2t_eff8, b2_eff.astype(jnp.float32))

    return out[0, :B][:, None]                               # back to (B, 1)


def make_params(key, input_dim, hidden_dim):
    ks = jax.random.split(key, 8)
    # Shapes match nn.Linear (stored transposed as (in, out)) / nn.BatchNorm1d.
    w1 = jax.random.normal(ks[0], (input_dim, hidden_dim), jnp.float32) * 0.1
    b1 = jax.random.normal(ks[1], (1, hidden_dim), jnp.float32) * 0.1
    gamma = 1.0 + 0.1 * jax.random.normal(ks[2], (1, hidden_dim), jnp.float32)
    beta = 0.1 * jax.random.normal(ks[3], (1, hidden_dim), jnp.float32)
    mean = 0.1 * jax.random.normal(ks[4], (1, hidden_dim), jnp.float32)
    var = jnp.abs(1.0 + 0.1 * jax.random.normal(ks[5], (1, hidden_dim), jnp.float32))
    w2 = jax.random.normal(ks[6], (hidden_dim, 1), jnp.float32) * 0.1
    b2 = jax.random.normal(ks[7], (1, 1), jnp.float32) * 0.1
    return dict(w1=w1, b1=b1, gamma=gamma, beta=beta, mean=mean, var=var,
                w2=w2, b2=b2)


def reference_forward(x, p):
    # Unfused reference with the exact PyTorch eval-mode semantics.
    h = jnp.maximum(x @ p["w1"] + p["b1"], 0.0)
    h = (h - p["mean"]) / jnp.sqrt(p["var"] + BN_EPS) * p["gamma"] + p["beta"]
    y = h @ p["w2"] + p["b2"]
    return jax.nn.sigmoid(y)


if __name__ == "__main__":
    key = jax.random.PRNGKey(0)
    k_p, k1, k2, k3, k4 = jax.random.split(key, 5)

    INPUT_DIM, HIDDEN = 32, 64   # small shapes consistent with TorchMLP(32, [64])
    params = make_params(k_p, INPUT_DIM, HIDDEN)

    # Case 1: multi-step grid (two 256-row tiles), lane-dense (1, 256) stores.
    x1 = jax.random.normal(k1, (512, INPUT_DIM), jnp.float32)
    o1 = jax.block_until_ready(torch_mlp_forward(x1, params, block_b=256))
    r1 = reference_forward(x1, params)
    assert o1.shape == (512, 1)
    assert jnp.allclose(o1, r1, atol=2e-5, rtol=1e-4), "mismatch (B=512, tb=256)"

    # Case 2: ragged batch -> rows padded up to one 128-row (128-aligned) tile.
    x2 = jax.random.normal(k2, (50, INPUT_DIM), jnp.float32)
    o2 = jax.block_until_ready(torch_mlp_forward(x2, params))
    r2 = reference_forward(x2, params)
    assert o2.shape == (50, 1)
    assert jnp.allclose(o2, r2, atol=2e-5, rtol=1e-4), "mismatch (B=50)"

    # Case 3: the default 2048-row tile recommended by the perf review.
    x3 = jax.random.normal(k3, (2048, INPUT_DIM), jnp.float32)
    o3 = jax.block_until_ready(torch_mlp_forward(x3, params))
    r3 = reference_forward(x3, params)
    assert o3.shape == (2048, 1)
    assert jnp.allclose(o3, r3, atol=2e-5, rtol=1e-4), "mismatch (B=2048, tb=2048)"

    # Case 4: x already arrives in HBM as bf16 (the only case where the bf16
    # MXU path should be used); f32 accumulation via preferred_element_type.
    x4 = jax.random.normal(k4, (256, INPUT_DIM), jnp.float32).astype(jnp.bfloat16)
    o4 = jax.block_until_ready(torch_mlp_forward(x4, params))
    r4 = reference_forward(x4.astype(jnp.float32), params)
    assert o4.shape == (256, 1)
    assert jnp.allclose(o4, r4, atol=5e-3, rtol=5e-3), "mismatch (bf16 x)"

    print("KERNEL_OK")
</pallas_src>

<mosaic_0001>
module attributes {stable_mosaic.version = 11 : i64} {
  func.func @_mlp_kernel(%arg0: i32, %arg1: memref<256x32xf32, #tpu.memory_space<vmem>>, %arg2: memref<32x64xf32, #tpu.memory_space<vmem>>, %arg3: memref<1x64xf32, #tpu.memory_space<vmem>>, %arg4: memref<8x64xf32, #tpu.memory_space<vmem>>, %arg5: memref<1xf32, #tpu.memory_space<smem>>, %arg6: memref<1x256xf32, #tpu.memory_space<vmem>>) attributes {dimension_semantics = [#tpu.dimension_semantics<parallel>], iteration_bounds = array<i64: 2>, scalar_prefetch = 0 : i64, scratch_operands = 0 : i64, tpu.core_type = #tpu.core_type<tc>, window_params = [{transform_indices = @transform_0, window_bounds = array<i64: 256, 32>}, {pipeline_mode = #tpu.pipeline_mode<synchronous>, transform_indices = @transform_1, window_bounds = array<i64: 32, 64>}, {pipeline_mode = #tpu.pipeline_mode<synchronous>, transform_indices = @transform_2, window_bounds = array<i64: 1, 64>}, {pipeline_mode = #tpu.pipeline_mode<synchronous>, transform_indices = @transform_3, window_bounds = array<i64: 8, 64>}, {transform_indices = @transform_4, window_bounds = array<i64: 1>}, {transform_indices = @transform_5, window_bounds = array<i64: 1, 256>}]} {
    %c0 = arith.constant 0 : index
    %c0_0 = arith.constant 0 : index
    %0 = vector.load %arg1[%c0, %c0_0] : memref<256x32xf32, #tpu.memory_space<vmem>>, vector<256x32xf32>
    %c0_1 = arith.constant 0 : index
    %c0_2 = arith.constant 0 : index
    %1 = vector.load %arg2[%c0_1, %c0_2] : memref<32x64xf32, #tpu.memory_space<vmem>>, vector<32x64xf32>
    %cst = arith.constant dense<0.000000e+00> : vector<256x64xf32>
    %2 = tpu.matmul %0, %1, %cst {dimension_numbers = #tpu.dot_dimension_numbers<[1], [0], [0], [1], [0, 0, 1, 1], [], []>} : vector<256x32xf32>, vector<32x64xf32>, vector<256x64xf32> -> vector<256x64xf32>
    %c0_3 = arith.constant 0 : index
    %c0_4 = arith.constant 0 : index
    %3 = vector.load %arg3[%c0_3, %c0_4] : memref<1x64xf32, #tpu.memory_space<vmem>>, vector<1x64xf32>
    %4 = vector.broadcast %3 : vector<1x64xf32> to vector<256x64xf32>
    %5 = arith.addf %2, %4 : vector<256x64xf32>
    %cst_5 = arith.constant 0.000000e+00 : f32
    %6 = vector.broadcast %cst_5 : f32 to vector<256x64xf32>
    %7 = arith.maximumf %5, %6 : vector<256x64xf32>
    %c0_6 = arith.constant 0 : index
    %c0_7 = arith.constant 0 : index
    %8 = vector.load %arg4[%c0_6, %c0_7] : memref<8x64xf32, #tpu.memory_space<vmem>>, vector<8x64xf32>
    %cst_8 = arith.constant dense<0.000000e+00> : vector<8x256xf32>
    %9 = tpu.matmul %8, %7, %cst_8 {dimension_numbers = #tpu.dot_dimension_numbers<[1], [1], [0], [0], [0, 0, 1, 0], [], []>} : vector<8x64xf32>, vector<256x64xf32>, vector<8x256xf32> -> vector<8x256xf32>
    %10 = vector.extract_strided_slice %9 {offsets = [0, 0], sizes = [1, 256], strides = [1, 1]} : vector<8x256xf32> to vector<1x256xf32>
    %c0_9 = arith.constant 0 : index
    %11 = memref.load %arg5[%c0_9] : memref<1xf32, #tpu.memory_space<smem>>
    %12 = vector.broadcast %11 : f32 to vector<1x256xf32>
    %13 = arith.addf %10, %12 : vector<1x256xf32>
    %cst_10 = arith.constant 5.000000e-01 : f32
    %14 = vector.broadcast %cst_10 : f32 to vector<1x256xf32>
    %15 = arith.mulf %14, %13 : vector<1x256xf32>
    %16 = math.tanh %15 : vector<1x256xf32>
    %cst_11 = arith.constant 1.000000e+00 : f32
    %17 = vector.broadcast %cst_11 : f32 to vector<1x256xf32>
    %18 = arith.addf %16, %17 : vector<1x256xf32>
    %cst_12 = arith.constant 5.000000e-01 : f32
    %19 = vector.broadcast %cst_12 : f32 to vector<1x256xf32>
    %20 = arith.mulf %19, %18 : vector<1x256xf32>
    %c0_13 = arith.constant 0 : index
    %c0_14 = arith.constant 0 : index
    %21 = vector.load %arg6[%c0_13, %c0_14] : memref<1x256xf32, #tpu.memory_space<vmem>>, vector<1x256xf32>
    tpu.vector_store %arg6[%c0_13, %c0_14], %20 {strides = array<i32>} : memref<1x256xf32, #tpu.memory_space<vmem>>, vector<1x256xf32>,
    return
  }
  func.func @transform_0(%arg0: i32) -> (i32, i32) {
    %c0_i32 = arith.constant 0 : i32
    %c0_i32_0 = arith.constant 0 : i32
    return %arg0, %c0_i32 : i32, i32
  }
  func.func @transform_1(%arg0: i32) -> (i32, i32) {
    %c0_i32 = arith.constant 0 : i32
    %c0_i32_0 = arith.constant 0 : i32
    %c0_i32_1 = arith.constant 0 : i32
    return %c0_i32, %c0_i32_0 : i32, i32
  }
  func.func @transform_2(%arg0: i32) -> (i32, i32) {
    %c0_i32 = arith.constant 0 : i32
    %c0_i32_0 = arith.constant 0 : i32
    %c0_i32_1 = arith.constant 0 : i32
    return %c0_i32, %c0_i32_0 : i32, i32
  }
  func.func @transform_3(%arg0: i32) -> (i32, i32) {
    %c0_i32 = arith.constant 0 : i32
    %c0_i32_0 = arith.constant 0 : i32
    %c0_i32_1 = arith.constant 0 : i32
    return %c0_i32, %c0_i32_0 : i32, i32
  }
  func.func @transform_4(%arg0: i32) -> i32 {
    %c0_i32 = arith.constant 0 : i32
    %c0_i32_0 = arith.constant 0 : i32
    return %c0_i32 : i32
  }
  func.func @transform_5(%arg0: i32) -> (i32, i32) {
    %c0_i32 = arith.constant 0 : i32
    %c0_i32_0 = arith.constant 0 : i32
    return %c0_i32, %arg0 : i32, i32
  }
}

</mosaic_0001>

<bundles_post_ra>
// kernel: tpu_custom_call.1
= control target key start
LH: loop header
LB: loop body
LE: loop exit
PB: predicated region body
PF: predicated region fallthrough
CT: control target
= control target key end

     0   :  { %s1243_s0 = inlined_call_operand.vmem [shape: f32[512,32], index: 0, kind: input, shape index: {}]   ;;  %s1244_s1 = inlined_call_operand.vmem [shape: f32[32,64], index: 1, kind: input, shape index: {}]   ;;  %s1245_s2 = inlined_call_operand.vmem [shape: f32[1,64], index: 2, kind: input, shape index: {}]   ;;  %s1246_s3 = inlined_call_operand.vmem [shape: f32[8,64], index: 3, kind: input, shape index: {}]   ;;  %s1247_s4 = inlined_call_operand.<no memory space> [shape: f32[1], index: 4, kind: input, shape index: {}]   ;;  %s1248_s5 = inlined_call_operand.hbm [shape: f32[1,512], index: 5, kind: output, shape index: {}]  }
   0x1   :  { %10 = sst [smem:[#allocation2]] %s1247_s4 }
   0x2   :  { %11 = vsyncpa [#allocation4], 0 }
   0x3   :  { %13 = vsyncpa [#allocation4 + $0x1], 0  ;;  %s974_s20 = smov 0   ;;  %s976_s21 = smov 0  }
   0x4   :  { %s978_s22 = smov 0   ;;  %s980_s23 = smov 0  }
   0x5 LB: > { %s995_s4 = sadd.s32 4294967295, %s939_s23   ;;  %s748_s24 = sadd.s32 4294967294, %s939_s23   ;;  %s939_s23 = sphi %s980_s23, %s1254_s23   ;;  %s935_s22 = sphi %s978_s22, %s1253_s22   ;;  %s931_s21 = sphi %s976_s21, %s1252_s21   ;;  %s927_s20 = sphi %s974_s20, %s1251_s20  }
   0x6   : > { %s999_s25 = sadd.s32 1, %s939_s23   ;;  %s136_s26 = sadd.s32 1, %s935_s22 }
   0x7   : > { %s133_s27 = ssub.s32 %s939_s23, %s999_s25  ;;  %p146_p0 = scmp.ne.s32.totalorder %s935_s22, %s931_s21 }
   0x8   : > { %p134_p1 = scmp.eq.s32.totalorder %s133_s27, 0  ;;  %p147_p2 = scmp.eq.s32.totalorder %s995_s4, 1 }
   0x9   : > { %p152_p3 = scmp.ne.s32.totalorder %s931_s21, %s927_s20  ;;  %p153_p4 = scmp.eq.s32.totalorder %s748_s24, 1 }
   0xa   : > { %s1010_s28 = scalar_select %p134_p1, %s935_s22, %s136_s26  }
   0xb   : > { %p1012_p5 = por %p147_p2, %p146_p0  ;;  %p1016_p6 = por %p153_p4, %p152_p3 }
   0xc   : > { %p751_p7 = scmp.ge.s32.totalorder %s939_s23, 1  ;;  %p192_p8 = scmp.lt.s32.totalorder %s939_s23, 3 }
   0xe   : > { %p193_p9 = pnand %p751_p7, %p192_p8 }
   0xf   : > { %s753_s10 = sshll.u32 (!%p193_p9), %s995_s4, 5  ;;  %s650_s6 = sld [smem:[#allocation2]] (!%p193_p9) }
  0x10   : > { %196 = sbr.rel (%p193_p9) target bundleno = 461 (0x1cd), region = 40  ;;  %p221_p10 = scmp.lt.s32.totalorder (!%p193_p9), %s753_s10, 63 }
  0x11   : > { %s217_s7 = sand.u32 (!%p193_p9), 1, %s931_s21   ;;  %s822_s9 = sshll.u32 (!%p193_p9), %s995_s4, 1 }
  0x12   : > { %s752_s8 = sshll.u32 (!%p193_p9), %s217_s7, 1  ;;  %s684_s12 = scalar_lea.hbm (!%p193_p9), %s1248_s5, %s822_s9 }
  0x13   : > { %s219_s13 = scalar_lea.vmem (!%p193_p9), [#allocation3], %s752_s8  ;;  %s674_s4 = scalar_lea.sflag (!%p193_p9), [#allocation4], %s217_s7 }
  0x14   : > { %s686_s14 = sshll.u32 (!%p193_p9), %s219_s13, 4  ;;  %s897_s24 = scalar_lea.hbm (!%p193_p9), %s1248_s5, 4  ;;  %s687_s14 = int_to_ptr.vmem [resolvable:$true] %s686_s14 }
  0x15   : > { %v262_v0 = vld [vmem:[%s1244_s1 + $0x18] sm:$0xff]  ;;  %v261_v1 = vld [vmem:[%s1244_s1 + $0x10] sm:$0xff]  ;;  %v260_v2 = vld [vmem:[%s1244_s1 + $0x8] sm:$0xff]  ;;  %s1256_s10 = smov (!%p221_p10, %s753_s10), 63  ;;  %vm267_vm0 = vcmask 261120   ;;  %vm510_vm1 = vcmask 523264  }
  0x16   : > { %376 = vmatpush.msra.mxu0 %v262_v0  ;;  %826 = vmatpush.msra.mxu3 %v262_v0  ;;  %v259_v3 = vld [vmem:[%s1244_s1] sm:$0xff]  ;;  %s754_s15 = sshll.u32 %s1256_s10, 3  ;;  %vm665_vm2 = vcmask 1040384  }
  0x17   : > { %825 = vmatpush.msra.mxu1 %v262_v0  ;;  %s1038_s18 = scalar_lea.vmem %s1243_s0, %s754_s15  ;;  %v1121_v46 = vld [vmem:[%s1245_s2] ss:$0 sm:$0xff]  ;;  %s688_s15 = sshll.u32 %s684_s12, 4  ;;  %s689_s15 = int_to_ptr.hbm [resolvable:$true] %s688_s15 }
  0x18   : > { %377 = vmatpush.msra.mxu0 %v261_v1  ;;  %828 = vmatpush.msra.mxu3 %v261_v1  ;;  %v227_v4 = vld [vmem:[%s1038_s18] sm:$0xff]  ;;  %v248_v5 = vld [vmem:[%s1038_s18 + $0xa8] sm:$0xff]  ;;  %v249_v8 = vld [vmem:[%s1038_s18 + $0xb0] sm:$0xff]  ;;  %s891_s16 = sshra.s32 %s689_s15, 4  ;;  %s892_s16 = int_to_ptr.hbm [resolvable:$true] %s891_s16 }
  0x19   : > { %827 = vmatpush.msra.mxu1 %v261_v1  ;;  %v239_v6 = vld [vmem:[%s1038_s18 + $0x60] sm:$0xff]  ;;  %v228_v7 = vld [vmem:[%s1038_s18 + $0x8] sm:$0xff]  ;;  %v229_v10 = vld [vmem:[%s1038_s18 + $0x10] sm:$0xff]  ;;  %s893_s17 = scalar_lea.hbm %s892_s16, 2  ;;  %p898_p0 = scmp.lt.s32.totalorder %s892_s16, %s1248_s5 }
  0x1a   : > { %378 = vmatpush.msra.mxu0 %v260_v2  ;;  %830 = vmatpush.msra.mxu3 %v260_v2  ;;  %v240_v9 = vld [vmem:[%s1038_s18 + $0x68] sm:$0xff]  ;;  %v250_v11 = vld [vmem:[%s1038_s18 + $0xb8] sm:$0xff]  ;;  %v241_v12 = vld [vmem:[%s1038_s18 + $0x70] sm:$0xff]  ;;  %p894_p11 = scmp.ne.s32.totalorder %s892_s16, %s893_s17  ;;  %p899_p1 = scmp.lt.s32.totalorder %s897_s24, %s893_s17 }
  0x1b   : > { %829 = vmatpush.msra.mxu1 %v260_v2  ;;  %v230_v13 = vld [vmem:[%s1038_s18 + $0x18] sm:$0xff]  ;;  %v251_v14 = vld [vmem:[%s1038_s18 + $0xc0] sm:$0xff]  ;;  %v252_v17 = vld [vmem:[%s1038_s18 + $0xc8] sm:$0xff] }
  0x1c   : > { %379 = vmatpush.msra.mxu0 %v259_v3  ;;  %832 = vmatpush.msra.mxu3 %v259_v3  ;;  %v242_v15 = vld [vmem:[%s1038_s18 + $0x78] sm:$0xff]  ;;  %v231_v16 = vld [vmem:[%s1038_s18 + $0x20] sm:$0xff]  ;;  %v232_v18 = vld [vmem:[%s1038_s18 + $0x28] sm:$0xff]  ;;  %p895_p12 = pnand %p894_p11, %p1012_p5  ;;  %p900_p2 = por %p899_p1, %p898_p0 }
  0x1d   : > { %755 = vmatmul.msk.f32.vlgmr.msra.gmra.mxu0 %vm267_vm0, %v227_v4  ;;  %776 = vmatmul.msk.f32.vlgmr.msra.gmra.mxu3 %vm267_vm0, %v248_v5  ;;  %v253_v19 = vld [vmem:[%s1038_s18 + $0xd0] sm:$0xff]  ;;  %v254_v21 = vld [vmem:[%s1038_s18 + $0xd8] sm:$0xff]  ;;  %v255_v23 = vld [vmem:[%s1038_s18 + $0xe0] sm:$0xff] }
  0x1e   : > { %831 = vmatpush.msra.mxu1 %v259_v3  ;;  %v233_v20 = vld [vmem:[%s1038_s18 + $0x30] sm:$0xff]  ;;  %v234_v22 = vld [vmem:[%s1038_s18 + $0x38] sm:$0xff]  ;;  %v243_v24 = vld [vmem:[%s1038_s18 + $0x80] sm:$0xff]  ;;  %p896_p13 = pneg %p895_p12 }
  0x1f   : > { %767 = vmatmul.msk.f32.vlgmr.msra.gmra.mxu1 %vm267_vm0, %v239_v6  ;;  %v235_v25 = vld [vmem:[%s1038_s18 + $0x40] sm:$0xff]  ;;  %v256_v26 = vld [vmem:[%s1038_s18 + $0xe8] sm:$0xff]  ;;  %v257_v29 = vld [vmem:[%s1038_s18 + $0xf0] sm:$0xff] }
  0x20   : > { %v244_v27 = vld [vmem:[%s1038_s18 + $0x88] sm:$0xff]  ;;  %v245_v30 = vld [vmem:[%s1038_s18 + $0x90] sm:$0xff]  ;;  %v258_v32 = vld [vmem:[%s1038_s18 + $0xf8] sm:$0xff]  ;;  %p901_p3 = pnand %p900_p2, %p896_p13 }
  0x21   : > { %v236_v28 = vld [vmem:[%s1038_s18 + $0x48] sm:$0xff]  ;;  %v237_v31 = vld [vmem:[%s1038_s18 + $0x50] sm:$0xff]  ;;  %v246_v33 = vld [vmem:[%s1038_s18 + $0x98] sm:$0xff] }
  0x22   : > { %v238_v34 = vld [vmem:[%s1038_s18 + $0x58] sm:$0xff]  ;;  %v247_v35 = vld [vmem:[%s1038_s18 + $0xa0] sm:$0xff] }
  0x25   : > { %756 = vmatmul.msk.f32.gmra.mxu0 %vm267_vm0, %v228_v7  ;;  %777 = vmatmul.msk.f32.gmra.mxu3 %vm267_vm0, %v249_v8 }
  0x27   : > { %768 = vmatmul.msk.f32.gmra.mxu1 %vm267_vm0, %v240_v9 }
  0x2d   : > { %757 = vmatmul.msk.f32.gmra.mxu0 %vm267_vm0, %v229_v10  ;;  %778 = vmatmul.msk.f32.gmra.mxu3 %vm267_vm0, %v250_v11 }
  0x2f   : > { %769 = vmatmul.msk.f32.gmra.mxu1 %vm267_vm0, %v241_v12 }
  0x35   : > { %758 = vmatmul.msk.f32.gmra.mxu0 %vm267_vm0, %v230_v13  ;;  %779 = vmatmul.msk.f32.gmra.mxu3 %vm267_vm0, %v251_v14 }
  0x37   : > { %770 = vmatmul.msk.f32.gmra.mxu1 %vm267_vm0, %v242_v15 }
  0x3d   : > { %759 = vmatmul.msk.f32.gmra.mxu0 %vm267_vm0, %v231_v16  ;;  %780 = vmatmul.msk.f32.gmra.mxu3 %vm267_vm0, %v252_v17 }
  0x3f   : > { %771 = vmatmul.msk.f32.gmra.mxu1 %vm267_vm0, %v243_v24 }
  0x45   : > { %760 = vmatmul.msk.f32.gmra.mxu0 %vm267_vm0, %v232_v18  ;;  %781 = vmatmul.msk.f32.gmra.mxu3 %vm267_vm0, %v253_v19 }
  0x47   : > { %772 = vmatmul.msk.f32.gmra.mxu1 %vm267_vm0, %v244_v27 }
  0x4d   : > { %761 = vmatmul.msk.f32.gmra.mxu0 %vm267_vm0, %v233_v20  ;;  %782 = vmatmul.msk.f32.gmra.mxu3 %vm267_vm0, %v254_v21 }
  0x4f   : > { %773 = vmatmul.msk.f32.gmra.mxu1 %vm267_vm0, %v245_v30 }
  0x55   : > { %762 = vmatmul.msk.f32.gmra.mxu0 %vm267_vm0, %v234_v22  ;;  %783 = vmatmul.msk.f32.gmra.mxu3 %vm267_vm0, %v255_v23 }
  0x57   : > { %774 = vmatmul.msk.f32.gmra.mxu1 %vm267_vm0, %v246_v33 }
  0x5d   : > { %763 = vmatmul.msk.f32.gmra.mxu0 %vm267_vm0, %v235_v25  ;;  %784 = vmatmul.msk.f32.gmra.mxu3 %vm267_vm0, %v256_v26 }
  0x5f   : > { %775 = vmatmul.msk.f32.gmra.mxu1 %vm267_vm0, %v247_v35 }
  0x65   : > { %764 = vmatmul.msk.f32.gmra.mxu0 %vm267_vm0, %v236_v28  ;;  %785 = vmatmul.msk.f32.gmra.mxu3 %vm267_vm0, %v257_v29 }
  0x6d   : > { %765 = vmatmul.msk.f32.gmra.mxu0 %vm267_vm0, %v237_v31  ;;  %786 = vmatmul.msk.f32.gmra.mxu3 %vm267_vm0, %v258_v32 }
  0x75   : > { %766 = vmatmul.msk.f32.gmra.mxu0 %vm267_vm0, %v238_v34 }
  0x9a   : > { %v1104_v36 = vpop.f32.mrf.mxu0 }
  0x9c   : > { %v417_v37 = vpop.f32.mrf.mxu1 }
  0x9d   : > { %v418_v55 = vadd.f32 %v1121_v46, %v417_v37 }
  0x9f   : > { %v489_v58 = vmax.f32 %v418_v55, 0.0 }
  0xa0   : > { %v1106_v38 = vpop.f32.mrf.mxu3 }
  0xa2   : > { %v1108_v39 = vpop.f32.mrf.mxu0 }
  0xa4   : > { %v420_v40 = vpop.f32.mrf.mxu1 }
  0xa5   : > { %v421_v52 = vadd.f32 %v1121_v46, %v420_v40 }
  0xa7   : > { %v490_v56 = vmax.f32 %v421_v52, 0.0 }
  0xa8   : > { %v1110_v41 = vpop.f32.mrf.mxu3 }
  0xa9   : > { %v448_v55 = vadd.f32 %v1121_v46, %v1110_v41 }
  0xaa   : > { %v1112_v42 = vpop.f32.mrf.mxu0 }
  0xac   : > { %v423_v43 = vpop.f32.mrf.mxu1 }
  0xad   : > { %v424_v48 = vadd.f32 %v1121_v46, %v423_v43 }
  0xaf   : > { %v491_v53 = vmax.f32 %v424_v48, 0.0 }
  0xb0   : > { %v1114_v44 = vpop.f32.mrf.mxu3 }
  0xb2   : > { %v1116_v45 = vpop.f32.mrf.mxu0 }
  0xb4   : > { %v426_v47 = vpop.f32.mrf.mxu1 }
  0xb5   : > { %v427_v49 = vadd.f32 %v1121_v46, %v426_v47 }
  0xb7   : > { %v492_v50 = vmax.f32 %v427_v49, 0.0 }
  0xb8   : > { %v1125_v51 = vpop.f32.mrf.mxu3 }
  0xb9   : > { %787 = vmatpush.xpose.msk.msrb.mxu1 %vm510_vm1, %v492_v50  ;;  %v454_v40 = vadd.f32 %v1121_v46, %v1125_v51  ;;  %v451_v50 = vadd.f32 %v1121_v46, %v1114_v44 }
  0xba   : > { %v1129_v54 = vpop.f32.mrf.mxu0 }
  0xbb   : > { %v394_v48 = vadd.f32 %v1121_v46, %v1129_v54  ;;  %v501_v52 = vmax.f32 %v454_v40, 0.0  ;;  %v388_v54 = vadd.f32 %v1121_v46, %v1112_v42  ;;  %v382_v42 = vadd.f32 %v1121_v46, %v1104_v36  ;;  %v509_v36 = vld [vmem:[%s1246_s3] sm:$0xff] }
  0xbc   : > { %v1135_v6 = vpop.f32.mrf.mxu1 }
  0xbd   : > { %788 = vmatpush.xpose.msk.msrb.mxu1 %vm510_vm1, %v491_v53  ;;  %v391_v53 = vadd.f32 %v1121_v46, %v1116_v45  ;;  %v481_v51 = vmax.f32 %v394_v48, 0.0  ;;  %v499_v45 = vmax.f32 %v448_v55, 0.0  ;;  %v479_v41 = vmax.f32 %v388_v54, 0.0 }
  0xc0   : > { %v456_v57 = vpop.f32.mrf.mxu3 }
  0xc1   : > { %789 = vmatpush.xpose.msk.msrb.mxu1 %vm510_vm1, %v490_v56  ;;  %v457_v33 = vadd.f32 %v1121_v46, %v456_v57  ;;  %v500_v56 = vmax.f32 %v451_v50, 0.0  ;;  %v480_v57 = vmax.f32 %v391_v53, 0.0 }
  0xc2   : > { %v396_v59 = vpop.f32.mrf.mxu0 }
  0xc3   : > { %v397_v35 = vadd.f32 %v1121_v46, %v396_v59  ;;  %v502_v43 = vmax.f32 %v457_v33, 0.0  ;;  %v385_v59 = vadd.f32 %v1121_v46, %v1108_v39  ;;  %v477_v39 = vmax.f32 %v382_v42, 0.0 }
  0xc4   : > { %v1144_v18 = vpop.f32.mrf.mxu1 }
  0xc5   : > { %790 = vmatpush.xpose.msk.msrb.mxu1 %vm510_vm1, %v489_v58  ;;  %v482_v49 = vmax.f32 %v397_v35, 0.0  ;;  %v445_v58 = vadd.f32 %v1121_v46, %v1106_v38 }
  0xc8   : > { %v459_v60 = vpop.f32.mrf.mxu3 }
  0xc9   : > { %v460_v29 = vadd.f32 %v1121_v46, %v459_v60 }
  0xca   : > { %v399_v61 = vpop.f32.mrf.mxu0 }
  0xcb   : > { %v400_v31 = vadd.f32 %v1121_v46, %v399_v61  ;;  %v503_v34 = vmax.f32 %v460_v29, 0.0  ;;  %v498_v61 = vmax.f32 %v445_v58, 0.0 }
  0xcc   : > { %v435_v28 = vpop.f32.mrf.mxu1 }
  0xcd   : > { %v483_v37 = vmax.f32 %v400_v31, 0.0 }
  0xd0   : > { %v462_v62 = vpop.f32.mrf.mxu3 }
  0xd1   : > { %v463_v24 = vadd.f32 %v1121_v46, %v462_v62  ;;  %v478_v62 = vmax.f32 %v385_v59, 0.0 }
  0xd2   : > { %v402_v63 = vpop.f32.mrf.mxu0 }
  0xd3   : > { %v403_v26 = vadd.f32 %v1121_v46, %v402_v63  ;;  %v504_v30 = vmax.f32 %v463_v24, 0.0 }
  0xd4   : > { %v438_v47 = vpop.f32.mrf.mxu1 }
  0xd5   : > { %v484_v32 = vmax.f32 %v403_v26, 0.0  ;;  %v439_v38 = vadd.f32 %v1121_v46, %v438_v47 }
  0xd8   : > { %v465_v0 = vpop.f32.mrf.mxu3 }
  0xd9   : > { %v466_v20 = vadd.f32 %v1121_v46, %v465_v0  ;;  %v436_v0 = vadd.f32 %v1121_v46, %v435_v28 }
  0xda   : > { %v405_v1 = vpop.f32.mrf.mxu0 }
  0xdb   : > { %v406_v22 = vadd.f32 %v1121_v46, %v405_v1  ;;  %v505_v25 = vmax.f32 %v466_v20, 0.0  ;;  %v496_v1 = vmax.f32 %v439_v38, 0.0 }
  0xdc   : > { %v441_v44 = vpop.f32.mrf.mxu1 }
  0xdd   : > { %v485_v27 = vmax.f32 %v406_v22, 0.0  ;;  %v442_v60 = vadd.f32 %v1121_v46, %v441_v44 }
  0xdf   : > { %v497_v63 = vmax.f32 %v442_v60, 0.0 }
  0xe0   : > { %v468_v2 = vpop.f32.mrf.mxu3 }
  0xe1   : > { %v469_v15 = vadd.f32 %v1121_v46, %v468_v2  ;;  %v433_v2 = vadd.f32 %v1121_v46, %v1144_v18 }
  0xe2   : > { %v408_v3 = vpop.f32.mrf.mxu0 }
  0xe3   : > { %v409_v19 = vadd.f32 %v1121_v46, %v408_v3  ;;  %v506_v21 = vmax.f32 %v469_v15, 0.0  ;;  %v495_v3 = vmax.f32 %v436_v0, 0.0 }
  0xe5   : > { %v486_v23 = vmax.f32 %v409_v19, 0.0 }
  0xe8   : > { %v471_v4 = vpop.f32.mrf.mxu3 }
  0xe9   : > { %v472_v10 = vadd.f32 %v1121_v46, %v471_v4  ;;  %v430_v4 = vadd.f32 %v1121_v46, %v1135_v6 }
  0xea   : > { %v411_v5 = vpop.f32.mrf.mxu0 }
  0xeb   : > { %v412_v11 = vadd.f32 %v1121_v46, %v411_v5  ;;  %v507_v16 = vmax.f32 %v472_v10, 0.0  ;;  %v494_v5 = vmax.f32 %v433_v2, 0.0 }
  0xed   : > { %v487_v17 = vmax.f32 %v412_v11, 0.0 }
  0xf0   : > { %v474_v7 = vpop.f32.mrf.mxu3 }
  0xf1   : > { %v475_v8 = vadd.f32 %v1121_v46, %v474_v7  ;;  %v493_v7 = vmax.f32 %v430_v4, 0.0 }
  0xf2   : > { %v414_v9 = vpop.f32.mrf.mxu0 }
  0xf3   : > { %v508_v12 = vmax.f32 %v475_v8, 0.0  ;;  %v415_v13 = vadd.f32 %v1121_v46, %v414_v9  ;;  %v651_v9 = vstv %s650_s6 }
  0xf5   : > { %v488_v14 = vmax.f32 %v415_v13, 0.0  ;;  %804 = vmatpush.xpose.msk.msra.mxu2 %vm510_vm1, %v508_v12 }
  0xf7   : > { %791 = vmatpush.xpose.msk.msrb.mxu1 %vm510_vm1, %v488_v14 }
  0xf9   : > { %805 = vmatpush.xpose.msk.msra.mxu2 %vm510_vm1, %v507_v16 }
  0xfb   : > { %792 = vmatpush.xpose.msk.msrb.mxu1 %vm510_vm1, %v487_v17  ;;  %v668_v17 = vlaneseq }
  0xfd   : > { %806 = vmatpush.xpose.msk.msra.mxu2 %vm510_vm1, %v506_v21  ;;  %vm670_vm3 = vcmp.lt.s32.totalorder %v668_v17, 256 }
  0xff   : > { %793 = vmatpush.xpose.msk.msrb.mxu1 %vm510_vm1, %v486_v23 }
 0x101   : > { %807 = vmatpush.xpose.msk.msra.mxu2 %vm510_vm1, %v505_v25 }
 0x103   : > { %794 = vmatpush.xpose.msk.msrb.mxu1 %vm510_vm1, %v485_v27 }
 0x105   : > { %808 = vmatpush.xpose.msk.msra.mxu2 %vm510_vm1, %v504_v30 }
 0x107   : > { %795 = vmatpush.xpose.msk.msrb.mxu1 %vm510_vm1, %v484_v32 }
 0x109   : > { %809 = vmatpush.xpose.msk.msra.mxu2 %vm510_vm1, %v503_v34 }
 0x10b   : > { %796 = vmatpush.xpose.msk.msrb.mxu1 %vm510_vm1, %v483_v37 }
 0x10d   : > { %810 = vmatpush.xpose.msk.msra.mxu2 %vm510_vm1, %v502_v43 }
 0x10f   : > { %797 = vmatpush.xpose.msk.msrb.mxu1 %vm510_vm1, %v482_v49 }
 0x111   : > { %811 = vmatpush.xpose.msk.msra.mxu2 %vm510_vm1, %v501_v52 }
 0x113   : > { %798 = vmatpush.xpose.msk.msrb.mxu1 %vm510_vm1, %v481_v51 }
 0x115   : > { %812 = vmatpush.xpose.msk.msra.mxu2 %vm510_vm1, %v500_v56 }
 0x117   : > { %799 = vmatpush.xpose.msk.msrb.mxu1 %vm510_vm1, %v480_v57 }
 0x119   : > { %813 = vmatpush.xpose.msk.msra.mxu2 %vm510_vm1, %v499_v45 }
 0x11b   : > { %800 = vmatpush.xpose.msk.msrb.mxu1 %vm510_vm1, %v479_v41 }
 0x11d   : > { %814 = vmatpush.xpose.msk.msra.mxu2 %vm510_vm1, %v498_v61 }
 0x11f   : > { %801 = vmatpush.xpose.msk.msrb.mxu1 %vm510_vm1, %v478_v62 }
 0x121   : > { %815 = vmatpush.xpose.msk.msra.mxu2 %vm510_vm1, %v497_v63 }
 0x123   : > { %802 = vmatpush.xpose.msk.msrb.mxu1 %vm510_vm1, %v477_v39 }
 0x125   : > { %816 = vmatpush.xpose.msk.msra.mxu2 %vm510_vm1, %v496_v1 }
 0x126   : > { %803 = vmatmul.msk.f32.vlgmr.msrb.gmra.mxu1 %vm510_vm1, %v509_v36 }
 0x129   : > { %817 = vmatpush.xpose.msk.msra.mxu2 %vm510_vm1, %v495_v3 }
 0x12d   : > { %818 = vmatpush.xpose.msk.msra.mxu2 %vm510_vm1, %v494_v5 }
 0x131   : > { %819 = vmatpush.xpose.msk.msra.mxu2 %vm510_vm1, %v493_v7 }
 0x134   : > { %820 = vmatmul.msk.f32.vlgmr.msra.gmra.mxu2 %vm510_vm1, %v509_v36 }
 0x1a3   : > { %v627_v8 = vpop.f32.mrf.mxu1 }
 0x1a4   : > { %v652_v10 = vadd.f32 %v651_v9, %v627_v8 }
 0x1a6   : > { %v654_v11 = vmul.f32 0.5, %v652_v10 }
 0x1a8   : > { %873 = vtanh.f32 %v654_v11 }
 0x1ae   : > { %v874_v46 = vpop.eup %873 }
 0x1af   : > { %v658_v6 = vadd.f32 1.0, %v874_v46 }
 0x1b1   : > { %v660_v19 = vmul.f32 0.5, %v658_v6 }
 0x1b7   : > { %v647_v12 = vpop.f32.mrf.mxu2 }
 0x1b8   : > { %v653_v13 = vadd.f32 %v651_v9, %v647_v12 }
 0x1ba   : > { %v655_v14 = vmul.f32 0.5, %v653_v13 }
 0x1bc   : > { %875 = vtanh.f32 %v655_v14 }
 0x1c2   : > { %v876_v15 = vpop.eup %875 }
 0x1c3   : > { %v659_v16 = vadd.f32 1.0, %v876_v15 }
 0x1c5   : > { %v661_v18 = vmul.f32 0.5, %v659_v16 }
 0x1c7   : > { %v664_v20 = vrot.slane %v661_v18, 7 }
 0x1c9   : > { %v666_v21 = vsel %vm665_vm2, %v660_v19, %v664_v20 }
 0x1ca   : > { %672 = vst.msk [vmem:[%s219_s13] sm:$0x3] %vm670_vm3, %v666_v21 }
 0x1cb   : > { %904 = shalt.err (!%p901_p3)
}
 0x1cc   : > { %833 = dma.vmem_to_hbm [thread:$0]  (%p1012_p5), %s687_s14, 32, %s689_s15, %s674_s4  }
 0x1cd PF: > { %p839_p4 = scmp.ge.s32.totalorder %s939_s23, 2  ;;  %s700_s6 = sand.u32 1, %s927_s20  }
 0x1ce   : > { %s701_s7 = scalar_lea.sflag [#allocation4], %s700_s6 }
 0x1cf   : > { %p836_p7 = pnand %p839_p4, %p1016_p6 }
 0x1d1   : > { %p837_p8 = pneg %p836_p7 }
 0x1d3   : > { %922 = dma.done.wait (%p837_p8), %s701_s7, 32  }
 0x1d4   : > { %924 = vsyncadd (%p837_p8), %s701_s7, 4294967264  ;;  %p16_p9 = scmp.ge.s32.totalorder %s999_s25, 4   ;;  %s1251_s20 = smov %s931_s21 }
 0x1d5   : > { %s1252_s21 = smov %s935_s22  ;;  %s1253_s22 = smov %s1010_s28 }
 0x1d6   : > { %s1254_s23 = smov %s999_s25  ;;  %18 = sbr.rel (!%p16_p9) target bundleno = 5 (0x5), region = 75 }
 0x1db   :  { %707 = vsyncpa [#allocation4], 1 }
 0x1dc   :  { %709 = vsyncpa [#allocation4 + $0x1], 1 }

</bundles_post_ra>
